<compile_context>
chip_gen: v7x
topology: tpu7x:2x2x1
jax: 0.10.0
libtpu: 0.0.40
codegen_flags: <defaults>
</compile_context>

<pallas_src>
import functools
import math

import jax
import jax.numpy as jnp
from jax.experimental import pallas as pl
from jax.experimental.pallas import tpu as pltpu


_ELEMENTWISE = (
    "relu", "sigmoid", "tanh", "softplus", "leaky_relu", "leakyrelu",
    "elu", "selu", "gelu", "swish", "mish",
)
_VALID_NAMES = frozenset(_ELEMENTWISE) | {"softmax"}


# --------------------------------------------------------------------------
# chip-generation aware constants
# --------------------------------------------------------------------------
def _tpu_generation():
    try:
        kind = jax.devices()[0].device_kind.lower()
    except Exception:
        return 0
    for g in (7, 6, 5, 4):
        if f"v{g}" in kind:
            return g
    return 0


def _num_tensorcores():
    """Cores that 'parallel' grid axes are sharded across."""
    try:
        kind = jax.devices()[0].device_kind.lower()
    except Exception:
        return 1
    if "v7" in kind:
        return 2                         # 2 TensorCores per chip
    if "v4" in kind or "v5p" in kind:    # megacore
        return 2
    return 1


_GEN = _tpu_generation()
_NUM_TC = _num_tensorcores()

if _GEN in (4, 5, 6):
    _VMEM_LIMIT_BYTES = 80 * 1024 * 1024      # 128 MiB physical on these chips
    _SOFTMAX_ROW_BUDGET = 8 * 1024 * 1024     # per-buffer budget vs last dim
else:
    _VMEM_LIMIT_BYTES = 48 * 1024 * 1024      # v7x: 64 MiB physical VMEM
    _SOFTMAX_ROW_BUDGET = 4 * 1024 * 1024

_TARGET_BLOCK_BYTES = 8 * 1024 * 1024         # per pipeline buffer (elementwise)
_MIN_SPLIT_BYTES = 512 * 1024                 # min per-step payload for megacore split
_SOFTMAX_INNER_BUDGET = 4 * 1024 * 1024       # per-buffer budget (inner-axis softmax)


def _round_up(x, m):
    return ((x + m - 1) // m) * m


def _round_down(x, m):
    return (x // m) * m


def _sublane_multiple(dtype):
    itemsize = jnp.dtype(dtype).itemsize
    if itemsize >= 4:
        return 8
    if itemsize == 2:
        return 16
    return 32


# --------------------------------------------------------------------------
# activation math (runs INSIDE the Pallas kernels)
# --------------------------------------------------------------------------
def _softplus(x, beta=1.0, threshold=20.0):
    # PyTorch Softplus: (1/beta) * log(1 + exp(beta * x)), linear above threshold.
    bx = beta * x
    sp = jnp.log1p(jnp.exp(jnp.minimum(bx, threshold))) / beta
    return jnp.where(bx > threshold, x, sp)


def _apply_elementwise(name, x, kwargs):
    if name == "relu":
        return jnp.maximum(x, 0)
    if name == "sigmoid":
        return jax.nn.sigmoid(x)
    if name == "tanh":
        return jnp.tanh(x)
    if name == "softplus":
        return _softplus(x, kwargs.get("beta", 1.0), kwargs.get("threshold", 20.0))
    if name in ("leaky_relu", "leakyrelu"):
        slope = kwargs.get("negative_slope", 0.01)
        return jnp.where(x >= 0, x, slope * x)
    if name == "elu":
        alpha = kwargs.get("alpha", 1.0)
        return jnp.where(x > 0, x, alpha * jnp.expm1(x))
    if name == "selu":
        alpha = 1.6732632423543772848170429916717
        scale = 1.0507009873554804934193349852946
        return scale * jnp.where(x > 0, x, alpha * jnp.expm1(x))
    if name == "gelu":
        # PyTorch default: exact erf-based GELU.
        return 0.5 * x * (1.0 + jax.lax.erf(x * 0.7071067811865476))
    if name == "swish":
        return x * jax.nn.sigmoid(x)
    if name == "mish":
        return x * jnp.tanh(_softplus(x))
    raise ValueError(f"Unknown activation function: {name}")


# --------------------------------------------------------------------------
# Pallas kernels
# --------------------------------------------------------------------------
def _elementwise_kernel(x_ref, o_ref, *, name, kwargs, compute_dtype):
    x = x_ref[...].astype(compute_dtype)
    y = _apply_elementwise(name, x, kwargs)
    o_ref[...] = y.astype(o_ref.dtype)


def _softmax_lastdim_kernel(x_ref, o_ref):
    # Numerically-stable softmax over the lane (last) axis of a (rows, cols) tile.
    x = x_ref[...].astype(jnp.float32)
    m = jnp.max(x, axis=-1, keepdims=True)
    e = jnp.exp(x - m)
    s = jnp.sum(e, axis=-1, keepdims=True)
    o_ref[...] = (e / s).astype(o_ref.dtype)


def _softmax_inner_kernel(x_ref, o_ref):
    # Numerically-stable softmax over the second-minor (sublane) axis of a
    # (bp, C, ts) tile -- no HBM transpose needed for dim != last.
    x = x_ref[...].astype(jnp.float32)
    m = jnp.max(x, axis=1, keepdims=True)
    e = jnp.exp(x - m)
    s = jnp.sum(e, axis=1, keepdims=True)
    o_ref[...] = (e / s).astype(o_ref.dtype)


# --------------------------------------------------------------------------
# elementwise wrapper
# --------------------------------------------------------------------------
def _pick_compute_dtype(name, dtype):
    if name == "relu":
        return dtype                       # keeps integer semantics too
    if name in ("leaky_relu", "leakyrelu"):
        return dtype if jnp.issubdtype(dtype, jnp.floating) else jnp.float32
    # transcendental-based activations
    if dtype == jnp.bfloat16 and _GEN >= 6 and name in ("sigmoid", "tanh", "swish"):
        return jnp.bfloat16                # v6e/v7x EUP/VPU have bf16 paths
    return jnp.float32


def _choose_2d_view(shape, total):
    """(rows, cols) with rows*cols == total; a free contiguous reshape (no pad)."""
    # Prefer a lane-dense slab (cols a large multiple of 128).  This covers
    # every tensor whose element count is 128-aligned.
    for lanes in (1024, 512, 256, 128):
        if total % lanes == 0:
            return total // lanes, lanes
    # Otherwise merge trailing dims until the lane axis reaches >= 128;
    # stores are masked but there is no extra HBM pass.
    dims = list(shape) if shape else [1]
    cols = dims[-1]
    i = len(dims) - 1
    while cols < 128 and i > 0:
        i -= 1
        cols *= dims[i]
    return total // cols, cols


def _elementwise_call(x2, name, kwargs, compute_dtype, block_rows, grid):
    kernel = functools.partial(
        _elementwise_kernel, name=name, kwargs=kwargs, compute_dtype=compute_dtype)
    rows, cols = x2.shape
    return pl.pallas_call(
        kernel,
        out_shape=jax.ShapeDtypeStruct((rows, cols), x2.dtype),
        grid=grid,
        in_specs=[pl.BlockSpec((block_rows, cols), lambda i: (i, 0))],
        out_specs=pl.BlockSpec((block_rows, cols), lambda i: (i, 0)),
        compiler_params=pltpu.CompilerParams(
            dimension_semantics=("parallel",),
            vmem_limit_bytes=_VMEM_LIMIT_BYTES,
        ),
    )(x2)


def _elementwise_padded(name, x, kwargs, compute_dtype):
    # Fallback for pathological shapes (huge, odd last dim that cannot be
    # blocked): one extra HBM read+write for pad + slice.
    # TODO(synk): could be replaced by a masked tail pallas_call.
    dtype = x.dtype
    total = int(math.prod(x.shape)) if x.shape else 1
    lanes = 1024
    sub = _sublane_multiple(dtype)
    rows = _round_up(max(pl.cdiv(total, lanes), 1), sub)
    padded = rows * lanes
    x_flat = x.reshape(-1)
    if padded != total:
        x_flat = jnp.pad(x_flat, (0, padded - total))
    x2 = x_flat.reshape(rows, lanes)
    row_bytes = lanes * jnp.dtype(dtype).itemsize
    max_rows = max(sub, _round_down(_TARGET_BLOCK_BYTES // row_bytes, sub))
    block_rows = rows if rows <= max_rows else max_rows
    grid = (pl.cdiv(rows, block_rows),)
    out2 = _elementwise_call(x2, name, kwargs, compute_dtype, block_rows, grid)
    out = out2.reshape(-1)
    if padded != total:
        out = out[:total]
    return out.reshape(x.shape)


def _elementwise_pallas(name, x, kwargs):
    orig_shape = x.shape
    dtype = x.dtype
    total = int(math.prod(orig_shape)) if orig_shape else 1
    if total == 0:
        return x

    compute_dtype = _pick_compute_dtype(name, dtype)
    itemsize = jnp.dtype(dtype).itemsize
    sub = _sublane_multiple(dtype)

    rows, cols = _choose_2d_view(orig_shape, total)
    row_bytes = cols * itemsize

    # Pathological case: the lane axis cannot be split (cols % 128 != 0) and
    # even the minimum legal block is far over budget -> padded slab fallback.
    if cols % 128 != 0 and sub * row_bytes > _TARGET_BLOCK_BYTES:
        return _elementwise_padded(name, x, kwargs, compute_dtype)

    # Biggest tile that stays within ~8 MiB / pipeline buffer; rows rounded to
    # the dtype-native sublane multiple.
    max_rows = max(sub, _round_down(_TARGET_BLOCK_BYTES // max(row_bytes, 1), sub))
    block_rows = rows if rows <= max_rows else max_rows

    # Multi-TensorCore chips: aim for >= 2 grid steps per core so each core
    # runs a pipelined loop, as long as each step stays >= ~512 KiB.
    if _NUM_TC > 1:
        min_steps = 2 * _NUM_TC
        if pl.cdiv(rows, block_rows) < min_steps:
            cand = max(sub, _round_up(pl.cdiv(rows, min_steps), sub))
            if cand < rows and cand * row_bytes >= _MIN_SPLIT_BYTES:
                block_rows = cand

    grid = (pl.cdiv(rows, block_rows),)
    x2 = x.reshape(rows, cols)
    out2 = _elementwise_call(x2, name, kwargs, compute_dtype, block_rows, grid)
    return out2.reshape(orig_shape)


# --------------------------------------------------------------------------
# softmax wrappers
# --------------------------------------------------------------------------
def _softmax_lastdim_pallas(x):
    orig_shape = x.shape
    dtype = x.dtype
    cols = orig_shape[-1]
    rows = int(math.prod(orig_shape[:-1])) if len(orig_shape) > 1 else 1
    x2 = x.reshape(rows, cols)
    sub = _sublane_multiple(dtype)

    # Size block_rows against cols (f32 compute copy) so vocab-sized last dims
    # never blow the VMEM limit.
    fit = _SOFTMAX_ROW_BUDGET // max(cols * 4, 1)
    block_rows = max(sub, _round_down(fit, sub))
    block_rows = min(block_rows, 2048)
    if rows <= block_rows:
        block_rows = rows
    # TODO(synk): cols so large that even `sub` rows exceed VMEM would need a
    # two-pass / online-softmax tiling over cols; not implemented.
    grid = (pl.cdiv(rows, block_rows),)

    out2 = pl.pallas_call(
        _softmax_lastdim_kernel,
        out_shape=jax.ShapeDtypeStruct((rows, cols), dtype),
        grid=grid,
        in_specs=[pl.BlockSpec((block_rows, cols), lambda i: (i, 0))],
        out_specs=pl.BlockSpec((block_rows, cols), lambda i: (i, 0)),
        compiler_params=pltpu.CompilerParams(
            dimension_semantics=("parallel",),
            vmem_limit_bytes=_VMEM_LIMIT_BYTES,
        ),
    )(x2)
    return out2.reshape(orig_shape)


def _softmax_inner_pallas(x, axis):
    # softmax over an inner axis (e.g. NCHW dim=1) WITHOUT an HBM transpose:
    # reshape to (prefix, C, suffix), reduce over the sublane axis C, and block
    # over BOTH prefix and suffix so each grid step moves a multi-MiB tile.
    orig_shape = x.shape
    dtype = x.dtype
    prefix = int(math.prod(orig_shape[:axis])) if axis > 0 else 1
    c = orig_shape[axis]
    suffix = int(math.prod(orig_shape[axis + 1:]))
    if prefix == 0 or c == 0 or suffix == 0:
        return x
    x3 = x.reshape(prefix, c, suffix)

    budget = _SOFTMAX_INNER_BUDGET
    if suffix >= 128:
        max_ts = max(128, _round_down(budget // (4 * c), 128))
        ts = min(_round_down(suffix, 128), 2048, max_ts)
    else:
        ts = suffix                        # equals full dim -> always legal
    bp = max(1, min(prefix, budget // max(c * ts * 4, 1)))
    grid = (pl.cdiv(prefix, bp), pl.cdiv(suffix, ts))

    out3 = pl.pallas_call(
        _softmax_inner_kernel,
        out_shape=jax.ShapeDtypeStruct((prefix, c, suffix), dtype),
        grid=grid,
        in_specs=[pl.BlockSpec((bp, c, ts), lambda i, j: (i, 0, j))],
        out_specs=pl.BlockSpec((bp, c, ts), lambda i, j: (i, 0, j)),
        compiler_params=pltpu.CompilerParams(
            dimension_semantics=("parallel", "parallel"),
            vmem_limit_bytes=_VMEM_LIMIT_BYTES,
        ),
    )(x3)
    return out3.reshape(orig_shape)


# --------------------------------------------------------------------------
# public entry point (mirrors ctorch.nn.Activation.forward semantics)
# --------------------------------------------------------------------------
def pallas_activation(name, x, dim=None, **kwargs):
    """Apply the named activation with Pallas TPU kernels (torch.nn semantics)."""
    name = name.lower()
    if name not in _VALID_NAMES:
        raise ValueError(f"Unknown activation function: {name}")
    if name == "softmax":
        if x.ndim == 0:
            return jnp.ones_like(x)
        if dim is None:
            # torch.nn.Softmax legacy default-dim heuristic
            dim = 0 if x.ndim in (0, 1, 3) else 1
        axis = dim if dim >= 0 else x.ndim + dim
        if axis == x.ndim - 1:
            return _softmax_lastdim_pallas(x)
        return _softmax_inner_pallas(x, axis)
    return _elementwise_pallas(name, x, kwargs)


# --------------------------------------------------------------------------
# main
# --------------------------------------------------------------------------
if __name__ == "__main__":
    key = jax.random.PRNGKey(0)
    # NCHW-style input, as the PyTorch module would typically receive.
    x = jax.random.normal(key, (2, 4, 16, 16), dtype=jnp.float32)

    refs = {
        "relu": jax.nn.relu(x),
        "sigmoid": jax.nn.sigmoid(x),
        "tanh": jnp.tanh(x),
        "gelu": jax.nn.gelu(x, approximate=False),
        "swish": jax.nn.silu(x),
        "softplus": jax.nn.softplus(x),
        "elu": jax.nn.elu(x),
        "selu": jax.nn.selu(x),
        "leaky_relu": jax.nn.leaky_relu(x, 0.01),
        "mish": x * jnp.tanh(jax.nn.softplus(x)),
    }

    ok = True
    for name, ref in refs.items():
        out = jax.block_until_ready(pallas_activation(name, x))
        if out.shape != ref.shape or not jnp.allclose(out, ref, atol=1e-5, rtol=1e-5):
            ok = False
            print(f"MISMATCH {name}: max err {float(jnp.max(jnp.abs(out - ref)))}")

    # softmax over an inner axis (NCHW dim=1) and over the last axis
    out = jax.block_until_ready(pallas_activation("softmax", x, dim=1))
    ref = jax.nn.softmax(x, axis=1)
    if out.shape != ref.shape or not jnp.allclose(out, ref, atol=1e-5, rtol=1e-5):
        ok = False
        print("MISMATCH softmax dim=1")
    out = jax.block_until_ready(pallas_activation("softmax", x, dim=-1))
    ref = jax.nn.softmax(x, axis=-1)
    if out.shape != ref.shape or not jnp.allclose(out, ref, atol=1e-5, rtol=1e-5):
        ok = False
        print("MISMATCH softmax dim=-1")

    # unaligned element count exercises the no-pad masked-store path
    xu = jax.random.normal(jax.random.PRNGKey(1), (3, 5, 7), dtype=jnp.float32)
    out = jax.block_until_ready(pallas_activation("relu", xu))
    if out.shape != xu.shape or not jnp.allclose(out, jax.nn.relu(xu), atol=1e-6):
        ok = False
        print("MISMATCH relu unaligned")

    # bf16 input (bf16 compute for sigmoid on v6e/v7x, f32 on v5e)
    xb = x.astype(jnp.bfloat16)
    out = jax.block_until_ready(pallas_activation("sigmoid", xb))
    ref_b = jax.nn.sigmoid(x).astype(jnp.bfloat16)
    if out.shape != ref_b.shape or not jnp.allclose(
            out.astype(jnp.float32), ref_b.astype(jnp.float32), atol=2e-2):
        ok = False
        print("MISMATCH sigmoid bf16")

    if ok:
        print("KERNEL_OK")
</pallas_src>

<mosaic_0001>
module attributes {stable_mosaic.version = 11 : i64} {
  func.func @_elementwise_kernel(%arg0: i32, %arg1: memref<2x1024xf32, #tpu.memory_space<vmem>>, %arg2: memref<2x1024xf32, #tpu.memory_space<vmem>>) attributes {dimension_semantics = [#tpu.dimension_semantics<parallel>], iteration_bounds = array<i64: 1>, scalar_prefetch = 0 : i64, scratch_operands = 0 : i64, tpu.core_type = #tpu.core_type<tc>, window_params = [{transform_indices = @transform_0, window_bounds = array<i64: 2, 1024>}, {transform_indices = @transform_1, window_bounds = array<i64: 2, 1024>}]} {
    %c0 = arith.constant 0 : index
    %c0_0 = arith.constant 0 : index
    %0 = vector.load %arg1[%c0, %c0_0] : memref<2x1024xf32, #tpu.memory_space<vmem>>, vector<2x1024xf32>
    %cst = arith.constant 0.000000e+00 : f32
    %1 = vector.broadcast %cst : f32 to vector<2x1024xf32>
    %2 = arith.maximumf %0, %1 : vector<2x1024xf32>
    %c0_1 = arith.constant 0 : index
    %c0_2 = arith.constant 0 : index
    %3 = vector.load %arg2[%c0_1, %c0_2] : memref<2x1024xf32, #tpu.memory_space<vmem>>, vector<2x1024xf32>
    tpu.vector_store %arg2[%c0_1, %c0_2], %2 {strides = array<i32>} : memref<2x1024xf32, #tpu.memory_space<vmem>>, vector<2x1024xf32>,
    return
  }
  func.func @transform_0(%arg0: i32) -> (i32, i32) {
    %c0_i32 = arith.constant 0 : i32
    %c0_i32_0 = arith.constant 0 : i32
    return %arg0, %c0_i32 : i32, i32
  }
  func.func @transform_1(%arg0: i32) -> (i32, i32) {
    %c0_i32 = arith.constant 0 : i32
    %c0_i32_0 = arith.constant 0 : i32
    return %arg0, %c0_i32 : i32, i32
  }
}

</mosaic_0001>

<bundles_post_ra>
// kernel: tpu_custom_call.1
= control target key start
LH: loop header
LB: loop body
LE: loop exit
PB: predicated region body
PF: predicated region fallthrough
CT: control target
= control target key end

     0   :  { %6 = vsyncpa [#allocation3], 0  ;;  %s128_s0 = inlined_call_operand.hbm [shape: f32[2,1024], index: 0, kind: input, shape index: {}]   ;;  %s129_s1 = inlined_call_operand.hbm [shape: f32[2,1024], index: 1, kind: output, shape index: {}]  }
   0x1   :  { %7 = vsyncpa [#allocation4], 0  ;;  %s92_s6 = smov [#allocation2]   ;;  %s44_s10 = scalar_lea.hbm %s128_s0, 256 }
   0x2   :  { %s14_s7 = sshll.u32 %s92_s6, 4  ;;  %p45_p0 = scmp.ne.s32.totalorder %s128_s0, %s44_s10  ;;  %s15_s7 = int_to_ptr.vmem [resolvable:$true] %s14_s7 }
   0x3   :  { %p48_p1 = scmp.lt.u32.totalorder %s44_s10, %s128_s0 }
   0x5   :  { %p50_p2 = pnand %p48_p1, %p45_p0 }
   0x7   :  { %53 = shalt.err (!%p50_p2)
}
   0x8   :  { %s54_s15 = scalar_lea.vmem %s15_s7, 256  ;;  %p59_p4 = scmp.lt.s32.totalorder %s15_s7, %s15_s7 }
   0x9   :  { %p55_p3 = scmp.ne.s32.totalorder %s15_s7, %s54_s15  ;;  %p60_p5 = scmp.lt.s32.totalorder %s54_s15, %s54_s15 }
   0xb   :  { %p61_p6 = por %p60_p5, %p59_p4 }
   0xd   :  { %p62_p7 = pnand %p61_p6, %p55_p3 }
   0xf   :  { %65 = shalt.err (!%p62_p7)
}
  0x10   :  { %17 = dma.hbm_to_vmem [thread:$0]  %s128_s0, 256, %s15_s7, [#allocation3]  }
  0x11   :  { %88 = dma.done.wait [#allocation3], 256  }
  0x12   :  { %89 = vsyncadd [#allocation3], 4294967040  ;;  %s93_s18 = smov [#allocation5]   ;;  %v21_v0 = vld [vmem:[#allocation2] sm:$0xff]  ;;  %v22_v1 = vld [vmem:[#allocation2 + $0x8] sm:$0xff] }
  0x13   :  { %s33_s19 = sshll.u32 %s93_s18, 4  ;;  %v23_v2 = vmax.f32 %v21_v0, 0.0  ;;  %v24_v3 = vmax.f32 %v22_v1, 0.0  ;;  %s34_s19 = int_to_ptr.vmem [resolvable:$true] %s33_s19 }
  0x14   :  { %s66_s20 = scalar_lea.vmem %s34_s19, 256  ;;  %p71_p9 = scmp.lt.s32.totalorder %s34_s19, %s34_s19 }
  0x15   :  { %25 = vst [vmem:[#allocation5] sm:$0xff] %v23_v2  ;;  %26 = vst [vmem:[#allocation5 + $0x8] sm:$0xff] %v24_v3  ;;  %p67_p8 = scmp.ne.s32.totalorder %s34_s19, %s66_s20  ;;  %p72_p10 = scmp.lt.s32.totalorder %s66_s20, %s66_s20 }
  0x17   :  { %p73_p11 = por %p72_p10, %p71_p9 }
  0x19   :  { %p74_p12 = pnand %p73_p11, %p67_p8 }
  0x1b   :  { %77 = shalt.err (!%p74_p12)
}
  0x1c   :  { %s78_s22 = scalar_lea.hbm %s129_s1, 256 }
  0x1d   :  { %p79_p13 = scmp.ne.s32.totalorder %s129_s1, %s78_s22  ;;  %p82_p0 = scmp.lt.u32.totalorder %s78_s22, %s129_s1 }
  0x1f   :  { %p84_p1 = pnand %p82_p0, %p79_p13 }
  0x21   :  { %87 = shalt.err (!%p84_p1)
}
  0x22   :  { %36 = dma.vmem_to_hbm [thread:$0]  %s34_s19, 256, %s129_s1, [#allocation4]  }
  0x23   :  { %90 = dma.done.wait [#allocation4], 256  }
  0x24   :  { %91 = vsyncadd [#allocation4], 4294967040 }
  0x25   :  { %40 = vsyncpa [#allocation3], 1 }
  0x26   :  { %41 = vsyncpa [#allocation4], 1 }

</bundles_post_ra>
